<compile_context>
chip_gen: v7x
topology: tpu7x:2x2x1
jax: 0.10.0
libtpu: 0.0.40
codegen_flags: <defaults>
</compile_context>

<pallas_src>
import jax
import jax.numpy as jnp
from jax.experimental import pallas as pl
from jax.experimental.pallas import tpu as pltpu

# Convex polynomial-activation coefficients (ReLU-approximating quadratic).
POLY_A = 0.09
POLY_B = 0.5
POLY_C = 0.47


def _round_up(x, m):
    return ((x + m - 1) // m) * m


def spliced_polyact_kernel(x_ref, wb_ref, bb_ref, u_ref, v_ref, out_ref):
    # ---- base.truncated_forward: linear + ReLU feature extractor ----------
    h = jnp.dot(x_ref[...], wb_ref[...],
                preferred_element_type=jnp.float32)            # (TB, D) f32 acc
    h = jnp.maximum(h + bb_ref[...], 0.0)

    # ---- polyact layer 1 + convex polynomial activation --------------------
    z = jnp.dot(h.astype(jnp.bfloat16), u_ref[...],
                preferred_element_type=jnp.float32)            # (TB, M)
    act = z * (POLY_A * z + POLY_B) + POLY_C                   # Horner form

    # ---- polyact layer 2 ----------------------------------------------------
    out_ref[...] = jnp.dot(act.astype(jnp.bfloat16), v_ref[...],
                           preferred_element_type=jnp.float32)  # (TB, Cls_pad)


def spliced_polyact(x_nchw, w_base, b_base, u_poly, v_poly):
    """x_nchw: (B, C, H, W) float32. Returns (B, num_classes) float32."""
    B = x_nchw.shape[0]
    x2d = x_nchw.reshape(B, -1)                                # (B, Din) glue
    Din = x2d.shape[1]
    D = w_base.shape[1]
    M = u_poly.shape[1]
    Cls = v_poly.shape[1]

    # Batch tile: multiple of 16 (bf16 sublane packing), up to 128 rows.
    TB = min(128, _round_up(max(B, 1), 16))
    B_pad = _round_up(B, TB)
    # Lane-dense output: pad classes to a multiple of 128.
    Cls_pad = _round_up(Cls, 128)

    # Prepare operands: bf16 matmul inputs, zero-padded where needed.
    x_p = jnp.pad(x2d, ((0, B_pad - B), (0, 0))).astype(jnp.bfloat16)
    w_b = w_base.astype(jnp.bfloat16)
    b_b = b_base.astype(jnp.float32).reshape(1, D)
    u_b = u_poly.astype(jnp.bfloat16)
    v_b = jnp.pad(v_poly, ((0, 0), (0, Cls_pad - Cls))).astype(jnp.bfloat16)

    grid = (B_pad // TB,)

    flops = 2 * B_pad * (Din * D + D * M + M * Cls_pad) + 4 * B_pad * M
    bytes_accessed = (x_p.size * 2 + w_b.size * 2 + b_b.size * 4 +
                      u_b.size * 2 + v_b.size * 2 + B_pad * Cls_pad * 4)

    # Conservative VMEM budget: double-buffered x/out tiles + resident weights
    # + f32 intermediates; stays well under v7x's 64 MiB at these tile sizes.
    vmem_bytes = (2 * TB * Din * 2 + 2 * TB * Cls_pad * 4 +
                  Din * D * 2 + D * 4 + D * M * 2 + M * Cls_pad * 2 +
                  3 * TB * max(D, M) * 4)
    vmem_limit = int(min(max(2 * vmem_bytes, 32 * 1024 * 1024),
                         100 * 1024 * 1024))

    out_full = pl.pallas_call(
        spliced_polyact_kernel,
        out_shape=jax.ShapeDtypeStruct((B_pad, Cls_pad), jnp.float32),
        grid_spec=pltpu.PrefetchScalarGridSpec(
            num_scalar_prefetch=0,
            grid=grid,
            in_specs=[
                pl.BlockSpec((TB, Din), lambda i: (i, 0)),      # x (batch-tiled)
                pl.BlockSpec((Din, D), lambda i: (0, 0)),       # base weight
                pl.BlockSpec((1, D), lambda i: (0, 0)),         # base bias
                pl.BlockSpec((D, M), lambda i: (0, 0)),         # polyact layer-1
                pl.BlockSpec((M, Cls_pad), lambda i: (0, 0)),   # polyact layer-2
            ],
            out_specs=pl.BlockSpec((TB, Cls_pad), lambda i: (i, 0)),
        ),
        compiler_params=pltpu.CompilerParams(
            dimension_semantics=("parallel",),
            vmem_limit_bytes=vmem_limit),
        cost_estimate=pl.CostEstimate(
            flops=flops, transcendentals=0, bytes_accessed=bytes_accessed),
    )(x_p, w_b, b_b, u_b, v_b)

    # Strip batch / class padding.
    return out_full[:B, :Cls]


def reference(x_nchw, w_base, b_base, u_poly, v_poly):
    x2d = x_nchw.reshape(x_nchw.shape[0], -1)
    h = jnp.maximum(x2d @ w_base + b_base, 0.0)
    z = h @ u_poly
    return (POLY_A * z * z + POLY_B * z + POLY_C) @ v_poly


if __name__ == "__main__":
    # Small, deterministic example shapes.
    B, C, H, W = 2, 4, 16, 16          # input image (NCHW)
    Din = C * H * W                    # 1024
    D = 128                            # base truncated-forward feature dim
    M = 256                            # polyact hidden neurons
    Cls = 16                           # output classes

    key = jax.random.PRNGKey(0)
    kx, kw, kb, ku, kv = jax.random.split(key, 5)

    x      = jax.random.normal(kx, (B, C, H, W), dtype=jnp.float32)
    w_base = jax.random.normal(kw, (Din, D), dtype=jnp.float32) * 0.02
    b_base = jax.random.normal(kb, (1, D),   dtype=jnp.float32) * 0.02
    u_poly = jax.random.normal(ku, (D, M),   dtype=jnp.float32) * 0.05
    v_poly = jax.random.normal(kv, (M, Cls), dtype=jnp.float32) * 0.05

    out = spliced_polyact(x, w_base, b_base, u_poly, v_poly)
    out = jax.block_until_ready(out)

    ref = reference(x, w_base, b_base, u_poly, v_poly)
    assert out.shape == (B, Cls)
    # bf16 matmul operands (f32 accumulation) -> slightly looser tolerance.
    assert jnp.allclose(out, ref, atol=2e-2, rtol=2e-2), "mismatch vs. reference"

    print("KERNEL_OK")
</pallas_src>

<mosaic_0001>
module attributes {stable_mosaic.version = 11 : i64} {
  func.func @spliced_polyact_kernel(%arg0: i32, %arg1: memref<16x1024xbf16, #tpu.memory_space<vmem>>, %arg2: memref<1024x128xbf16, #tpu.memory_space<vmem>>, %arg3: memref<1x128xf32, #tpu.memory_space<vmem>>, %arg4: memref<128x256xbf16, #tpu.memory_space<vmem>>, %arg5: memref<256x128xbf16, #tpu.memory_space<vmem>>, %arg6: memref<16x128xf32, #tpu.memory_space<vmem>>) attributes {dimension_semantics = [#tpu.dimension_semantics<parallel>], iteration_bounds = array<i64: 1>, scalar_prefetch = 0 : i64, scratch_operands = 0 : i64, tpu.core_type = #tpu.core_type<tc>, window_params = [{transform_indices = @transform_0, window_bounds = array<i64: 16, 1024>}, {pipeline_mode = #tpu.pipeline_mode<synchronous>, transform_indices = @transform_1, window_bounds = array<i64: 1024, 128>}, {pipeline_mode = #tpu.pipeline_mode<synchronous>, transform_indices = @transform_2, window_bounds = array<i64: 1, 128>}, {pipeline_mode = #tpu.pipeline_mode<synchronous>, transform_indices = @transform_3, window_bounds = array<i64: 128, 256>}, {pipeline_mode = #tpu.pipeline_mode<synchronous>, transform_indices = @transform_4, window_bounds = array<i64: 256, 128>}, {transform_indices = @transform_5, window_bounds = array<i64: 16, 128>}]} {
    %c0 = arith.constant 0 : index
    %c0_0 = arith.constant 0 : index
    %0 = vector.load %arg1[%c0, %c0_0] : memref<16x1024xbf16, #tpu.memory_space<vmem>>, vector<16x1024xbf16>
    %c0_1 = arith.constant 0 : index
    %c0_2 = arith.constant 0 : index
    %1 = vector.load %arg2[%c0_1, %c0_2] : memref<1024x128xbf16, #tpu.memory_space<vmem>>, vector<1024x128xbf16>
    %cst = arith.constant dense<0.000000e+00> : vector<16x128xf32>
    %2 = tpu.matmul %0, %1, %cst {dimension_numbers = #tpu.dot_dimension_numbers<[1], [0], [0], [1], [0, 0, 1, 1], [], []>} : vector<16x1024xbf16>, vector<1024x128xbf16>, vector<16x128xf32> -> vector<16x128xf32>
    %c0_3 = arith.constant 0 : index
    %c0_4 = arith.constant 0 : index
    %3 = vector.load %arg3[%c0_3, %c0_4] : memref<1x128xf32, #tpu.memory_space<vmem>>, vector<1x128xf32>
    %4 = vector.broadcast %3 : vector<1x128xf32> to vector<16x128xf32>
    %5 = arith.addf %2, %4 : vector<16x128xf32>
    %cst_5 = arith.constant 0.000000e+00 : f32
    %6 = vector.broadcast %cst_5 : f32 to vector<16x128xf32>
    %7 = arith.maximumf %5, %6 : vector<16x128xf32>
    %8 = arith.truncf %7 : vector<16x128xf32> to vector<16x128xbf16>
    %c0_6 = arith.constant 0 : index
    %c0_7 = arith.constant 0 : index
    %9 = vector.load %arg4[%c0_6, %c0_7] : memref<128x256xbf16, #tpu.memory_space<vmem>>, vector<128x256xbf16>
    %cst_8 = arith.constant dense<0.000000e+00> : vector<16x256xf32>
    %10 = tpu.matmul %8, %9, %cst_8 {dimension_numbers = #tpu.dot_dimension_numbers<[1], [0], [0], [1], [0, 0, 1, 1], [], []>} : vector<16x128xbf16>, vector<128x256xbf16>, vector<16x256xf32> -> vector<16x256xf32>
    %cst_9 = arith.constant 9.000000e-02 : f32
    %11 = vector.broadcast %cst_9 : f32 to vector<16x256xf32>
    %12 = arith.mulf %11, %10 : vector<16x256xf32>
    %cst_10 = arith.constant 5.000000e-01 : f32
    %13 = vector.broadcast %cst_10 : f32 to vector<16x256xf32>
    %14 = arith.addf %12, %13 : vector<16x256xf32>
    %15 = arith.mulf %10, %14 : vector<16x256xf32>
    %cst_11 = arith.constant 4.700000e-01 : f32
    %16 = vector.broadcast %cst_11 : f32 to vector<16x256xf32>
    %17 = arith.addf %15, %16 : vector<16x256xf32>
    %18 = arith.truncf %17 : vector<16x256xf32> to vector<16x256xbf16>
    %c0_12 = arith.constant 0 : index
    %c0_13 = arith.constant 0 : index
    %19 = vector.load %arg5[%c0_12, %c0_13] : memref<256x128xbf16, #tpu.memory_space<vmem>>, vector<256x128xbf16>
    %cst_14 = arith.constant dense<0.000000e+00> : vector<16x128xf32>
    %20 = tpu.matmul %18, %19, %cst_14 {dimension_numbers = #tpu.dot_dimension_numbers<[1], [0], [0], [1], [0, 0, 1, 1], [], []>} : vector<16x256xbf16>, vector<256x128xbf16>, vector<16x128xf32> -> vector<16x128xf32>
    %c0_15 = arith.constant 0 : index
    %c0_16 = arith.constant 0 : index
    %21 = vector.load %arg6[%c0_15, %c0_16] : memref<16x128xf32, #tpu.memory_space<vmem>>, vector<16x128xf32>
    tpu.vector_store %arg6[%c0_15, %c0_16], %20 {strides = array<i32>} : memref<16x128xf32, #tpu.memory_space<vmem>>, vector<16x128xf32>,
    return
  }
  func.func @transform_0(%arg0: i32) -> (i32, i32) {
    %c0_i32 = arith.constant 0 : i32
    %c0_i32_0 = arith.constant 0 : i32
    return %arg0, %c0_i32 : i32, i32
  }
  func.func @transform_1(%arg0: i32) -> (i32, i32) {
    %c0_i32 = arith.constant 0 : i32
    %c0_i32_0 = arith.constant 0 : i32
    %c0_i32_1 = arith.constant 0 : i32
    return %c0_i32, %c0_i32_0 : i32, i32
  }
  func.func @transform_2(%arg0: i32) -> (i32, i32) {
    %c0_i32 = arith.constant 0 : i32
    %c0_i32_0 = arith.constant 0 : i32
    %c0_i32_1 = arith.constant 0 : i32
    return %c0_i32, %c0_i32_0 : i32, i32
  }
  func.func @transform_3(%arg0: i32) -> (i32, i32) {
    %c0_i32 = arith.constant 0 : i32
    %c0_i32_0 = arith.constant 0 : i32
    %c0_i32_1 = arith.constant 0 : i32
    return %c0_i32, %c0_i32_0 : i32, i32
  }
  func.func @transform_4(%arg0: i32) -> (i32, i32) {
    %c0_i32 = arith.constant 0 : i32
    %c0_i32_0 = arith.constant 0 : i32
    %c0_i32_1 = arith.constant 0 : i32
    return %c0_i32, %c0_i32_0 : i32, i32
  }
  func.func @transform_5(%arg0: i32) -> (i32, i32) {
    %c0_i32 = arith.constant 0 : i32
    %c0_i32_0 = arith.constant 0 : i32
    return %arg0, %c0_i32 : i32, i32
  }
}

</mosaic_0001>

<bundles_post_ra>
// kernel: tpu_custom_call.1
= control target key start
LH: loop header
LB: loop body
LE: loop exit
PB: predicated region body
PF: predicated region fallthrough
CT: control target
= control target key end

     0   :  { %10 = vsyncpa [#allocation3], 0  ;;  %s1724_s0 = inlined_call_operand.hbm [shape: bf16[16,1024], index: 0, kind: input, shape index: {}]   ;;  %s1725_s1 = inlined_call_operand.hbm [shape: bf16[1024,128], index: 1, kind: input, shape index: {}]   ;;  %s1726_s2 = inlined_call_operand.vmem [shape: f32[1,128], index: 2, kind: input, shape index: {}]   ;;  %s1727_s3 = inlined_call_operand.hbm [shape: bf16[128,256], index: 3, kind: input, shape index: {}]   ;;  %s1728_s4 = inlined_call_operand.hbm [shape: bf16[256,128], index: 4, kind: input, shape index: {}]   ;;  %s1729_s5 = inlined_call_operand.hbm [shape: f32[16,128], index: 5, kind: output, shape index: {}]  }
   0x1   :  { %11 = vsyncpa [#allocation6], 0 }
   0x2   :  { %12 = vsyncpa [#allocation9], 0 }
   0x3   :  { %13 = vsyncpa [#allocation4], 0  ;;  %s1607_s18 = smov [#allocation5]   ;;  %s1489_s22 = scalar_lea.hbm %s1725_s1, 8192 }
   0x4   :  { %s31_s19 = sshll.u32 %s1607_s18, 4  ;;  %p1490_p0 = scmp.ne.s32.totalorder %s1725_s1, %s1489_s22  ;;  %s32_s19 = int_to_ptr.vmem [resolvable:$true] %s31_s19 }
   0x5   :  { %p1493_p1 = scmp.lt.u32.totalorder %s1489_s22, %s1725_s1 }
   0x7   :  { %p1495_p2 = pnand %p1493_p1, %p1490_p0 }
   0x9   :  { %1498 = shalt.err (!%p1495_p2)
}
   0xa   :  { %s1499_s27 = scalar_lea.vmem %s32_s19, 8192  ;;  %p1504_p4 = scmp.lt.s32.totalorder %s32_s19, %s32_s19 }
   0xb   :  { %p1500_p3 = scmp.ne.s32.totalorder %s32_s19, %s1499_s27  ;;  %p1505_p5 = scmp.lt.s32.totalorder %s1499_s27, %s1499_s27 }
   0xd   :  { %p1506_p6 = por %p1505_p5, %p1504_p4 }
   0xf   :  { %p1507_p7 = pnand %p1506_p6, %p1500_p3 }
  0x11   :  { %1510 = shalt.err (!%p1507_p7)
}
  0x12   :  { %s1608_s28 = smov 64   ;;  %s1609_s29 = smov 4  }
  0x13   :  { %37 = dma.hbm_to_vmem [thread:$0]  %s1725_s1, 8192, %s32_s19, [#allocation6], %s1608_s28, %s1608_s28, %s1609_s29  }
  0x14   :  { %s1610_s7 = smov [#allocation2]   ;;  %s1511_s11 = scalar_lea.hbm %s1724_s0, 1024 }
  0x15   :  { %s19_s8 = sshll.u32 %s1610_s7, 4  ;;  %p1512_p8 = scmp.ne.s32.totalorder %s1724_s0, %s1511_s11  ;;  %s20_s8 = int_to_ptr.vmem [resolvable:$true] %s19_s8 }
  0x16   :  { %p1515_p9 = scmp.lt.u32.totalorder %s1511_s11, %s1724_s0 }
  0x18   :  { %p1517_p10 = pnand %p1515_p9, %p1512_p8 }
  0x1a   :  { %1520 = shalt.err (!%p1517_p10)
}
  0x1b   :  { %s1521_s16 = scalar_lea.vmem %s20_s8, 1024  ;;  %p1526_p12 = scmp.lt.s32.totalorder %s20_s8, %s20_s8 }
  0x1c   :  { %p1522_p11 = scmp.ne.s32.totalorder %s20_s8, %s1521_s16  ;;  %p1527_p13 = scmp.lt.s32.totalorder %s1521_s16, %s1521_s16 }
  0x1e   :  { %p1528_p0 = por %p1527_p13, %p1526_p12 }
  0x20   :  { %p1529_p1 = pnand %p1528_p0, %p1522_p11 }
  0x22   :  { %1532 = shalt.err (!%p1529_p1)
}
  0x23   :  { %s1611_s1 = smov 512   ;;  %s1612_s17 = smov 32  }
  0x24   :  { %25 = dma.hbm_to_vmem [thread:$0]  %s1724_s0, 1024, %s20_s8, [#allocation3], %s1611_s1, %s1611_s1, %s1612_s17  }
  0x25   :  { %s1613_s20 = smov [#allocation7]   ;;  %s1533_s24 = scalar_lea.hbm %s1727_s3, 2048 }
  0x26   :  { %s45_s21 = sshll.u32 %s1613_s20, 4  ;;  %p1534_p2 = scmp.ne.s32.totalorder %s1727_s3, %s1533_s24  ;;  %s46_s21 = int_to_ptr.vmem [resolvable:$true] %s45_s21 }
  0x27   :  { %p1537_p3 = scmp.lt.u32.totalorder %s1533_s24, %s1727_s3 }
  0x29   :  { %p1539_p4 = pnand %p1537_p3, %p1534_p2 }
  0x2b   :  { %1542 = shalt.err (!%p1539_p4)
}
  0x2c   :  { %s1543_s6 = scalar_lea.vmem %s46_s21, 2048  ;;  %p1548_p6 = scmp.lt.s32.totalorder %s46_s21, %s46_s21 }
  0x2d   :  { %p1544_p5 = scmp.ne.s32.totalorder %s46_s21, %s1543_s6  ;;  %p1549_p7 = scmp.lt.s32.totalorder %s1543_s6, %s1543_s6 }
  0x2f   :  { %p1550_p8 = por %p1549_p7, %p1548_p6 }
  0x31   :  { %p1551_p9 = pnand %p1550_p8, %p1544_p5 }
  0x33   :  { %1554 = shalt.err (!%p1551_p9)
}
  0x34   :  { %s1614_s0 = smov 128   ;;  %s1615_s7 = smov 8  }
  0x35   :  { %51 = dma.hbm_to_vmem [thread:$0]  %s1727_s3, 2048, %s46_s21, [#allocation6], %s1614_s0, %s1614_s0, %s1615_s7  }
  0x36   :  { %s1616_s10 = smov [#allocation8]   ;;  %s1555_s14 = scalar_lea.hbm %s1728_s4, 2048 }
  0x37   :  { %s57_s11 = sshll.u32 %s1616_s10, 4  ;;  %p1556_p10 = scmp.ne.s32.totalorder %s1728_s4, %s1555_s14  ;;  %s58_s11 = int_to_ptr.vmem [resolvable:$true] %s57_s11 }
  0x38   :  { %p1559_p11 = scmp.lt.u32.totalorder %s1555_s14, %s1728_s4 }
  0x3a   :  { %p1561_p12 = pnand %p1559_p11, %p1556_p10 }
  0x3c   :  { %1564 = shalt.err (!%p1561_p12)
}
  0x3d   :  { %s1565_s18 = scalar_lea.vmem %s58_s11, 2048  ;;  %p1570_p0 = scmp.lt.s32.totalorder %s58_s11, %s58_s11 }
  0x3e   :  { %p1566_p13 = scmp.ne.s32.totalorder %s58_s11, %s1565_s18  ;;  %p1571_p1 = scmp.lt.s32.totalorder %s1565_s18, %s1565_s18 }
  0x40   :  { %p1572_p2 = por %p1571_p1, %p1570_p0 }
  0x42   :  { %p1573_p3 = pnand %p1572_p2, %p1566_p13 }
  0x44   :  { %1576 = shalt.err (!%p1573_p3)
}
  0x45   :  { %63 = dma.hbm_to_vmem [thread:$0]  %s1728_s4, 2048, %s58_s11, [#allocation9], %s1608_s28, %s1608_s28, %s1609_s29  }
  0x46   :  { %1599 = dma.done.wait [#allocation3], 1024  }
  0x47   :  { %1600 = vsyncadd [#allocation3], 4294966272 }
  0x48   :  { %1601 = dma.done.wait [#allocation6], 10240  }
  0x49   :  { %1602 = vsyncadd [#allocation6], 4294957056 }
  0x4a   :  { %1603 = dma.done.wait [#allocation9], 2048  }
  0x4b   :  { %1604 = vsyncadd [#allocation9], 4294965248  ;;  %v1385_v0 = vld [vmem:[#allocation5 + $0x40] sm:$0xff]   ;;  %v1389_v4 = vld [vmem:[#allocation5 + $0x48] sm:$0xff]  }
  0x4c   :  { %v1386_v1 = vld [vmem:[#allocation5 + $0xc0] sm:$0xff]   ;;  %1263 = vmatprep.subr.bf16.mxu0 %v1385_v0  ;;  %v1390_v5 = vld [vmem:[#allocation5 + $0xc8] sm:$0xff]   ;;  %v1393_v8 = vld [vmem:[#allocation5 + $0x50] sm:$0xff]  }
  0x4d   :  { %v1387_v2 = vld [vmem:[#allocation5] sm:$0xff]   ;;  %1285 = vmatprep.subr.bf16.mxu1 %v1386_v1  ;;  %v1391_v6 = vld [vmem:[#allocation5 + $0x8] sm:$0xff]   ;;  %v1394_v9 = vld [vmem:[#allocation5 + $0xd0] sm:$0xff]  }
  0x4e   :  { %v1388_v3 = vld [vmem:[#allocation5 + $0x80] sm:$0xff]   ;;  %1264 = vmatpush3.bf16.msra.mxu0 %v1387_v2  ;;  %v1392_v7 = vld [vmem:[#allocation5 + $0x88] sm:$0xff]   ;;  %v1395_v10 = vld [vmem:[#allocation5 + $0x10] sm:$0xff]  }
  0x4f   :  { %1286 = vmatpush3.bf16.msra.mxu1 %v1388_v3  ;;  %1265 = vmatprep.subr.bf16.mxu0 %v1389_v4  ;;  %v1396_v11 = vld [vmem:[#allocation5 + $0x90] sm:$0xff]   ;;  %v1397_v12 = vld [vmem:[#allocation5 + $0x58] sm:$0xff]   ;;  %v1401_v16 = vld [vmem:[#allocation5 + $0x60] sm:$0xff]  }
  0x50   :  { %1287 = vmatprep.subr.bf16.mxu1 %v1390_v5  ;;  %v1398_v13 = vld [vmem:[#allocation5 + $0xd8] sm:$0xff]   ;;  %v1402_v17 = vld [vmem:[#allocation5 + $0xe0] sm:$0xff]   ;;  %v1405_v20 = vld [vmem:[#allocation5 + $0x68] sm:$0xff]  }
  0x51   :  { %v1399_v14 = vld [vmem:[#allocation5 + $0x18] sm:$0xff]   ;;  %v1403_v18 = vld [vmem:[#allocation5 + $0x20] sm:$0xff]   ;;  %v1406_v21 = vld [vmem:[#allocation5 + $0xe8] sm:$0xff]  }
  0x52   :  { %1266 = vmatpush3.bf16.msra.mxu0 %v1391_v6  ;;  %v1400_v15 = vld [vmem:[#allocation5 + $0x98] sm:$0xff]   ;;  %v1404_v19 = vld [vmem:[#allocation5 + $0xa0] sm:$0xff]   ;;  %v1407_v22 = vld [vmem:[#allocation5 + $0x28] sm:$0xff]  }
  0x53   :  { %1288 = vmatpush3.bf16.msra.mxu1 %v1392_v7  ;;  %1267 = vmatprep.subr.bf16.mxu0 %v1393_v8  ;;  %v1408_v23 = vld [vmem:[#allocation5 + $0xa8] sm:$0xff]   ;;  %v1409_v24 = vld [vmem:[#allocation5 + $0x70] sm:$0xff]   ;;  %v1413_v28 = vld [vmem:[#allocation5 + $0x78] sm:$0xff]  }
  0x54   :  { %1289 = vmatprep.subr.bf16.mxu1 %v1394_v9  ;;  %v1410_v25 = vld [vmem:[#allocation5 + $0xf0] sm:$0xff]   ;;  %v1414_v29 = vld [vmem:[#allocation5 + $0xf8] sm:$0xff]   ;;  %v77_v32 = vld [vmem:[#allocation2] sm:$0xff] }
  0x55   :  { %v1411_v26 = vld [vmem:[#allocation5 + $0x30] sm:$0xff]   ;;  %v1415_v30 = vld [vmem:[#allocation5 + $0x38] sm:$0xff]   ;;  %v81_v33 = vld [vmem:[#allocation2 + $0x20] sm:$0xff] }
  0x56   :  { %1268 = vmatpush3.bf16.msra.mxu0 %v1395_v10  ;;  %v1412_v27 = vld [vmem:[#allocation5 + $0xb0] sm:$0xff]   ;;  %v1416_v31 = vld [vmem:[#allocation5 + $0xb8] sm:$0xff]   ;;  %v78_v34 = vld [vmem:[#allocation2 + $0x8] sm:$0xff]  ;;  %v1159_v35 = vcombine.low %v77_v32, %v81_v33  ;;  %v1160_v36 = vcombine.high %v77_v32, %v81_v33  ;;  %v1617_v32 = vmov 0  }
  0x57   :  { %1290 = vmatpush3.bf16.msra.mxu1 %v1396_v11  ;;  %1269 = vmatprep.subr.bf16.mxu0 %v1397_v12  ;;  %v82_v37 = vld [vmem:[#allocation2 + $0x28] sm:$0xff]  ;;  %v1417_v40 = vld [vmem:[#allocation5 + $0x140] sm:$0xff]   ;;  %v1425_v48 = vld [vmem:[#allocation5 + $0x150] sm:$0xff]  }
  0x58   :  { %1291 = vmatprep.subr.bf16.mxu1 %v1398_v13  ;;  %v1161_v38 = vcombine.low %v78_v34, %v82_v37  ;;  %v1162_v39 = vcombine.high %v78_v34, %v82_v37  ;;  %676 = vmatprep.mubr.bf16.mxu0 %v1160_v36  ;;  %v1418_v41 = vld [vmem:[#allocation5 + $0x1c0] sm:$0xff]   ;;  %v1421_v44 = vld [vmem:[#allocation5 + $0x148] sm:$0xff]   ;;  %v1426_v49 = vld [vmem:[#allocation5 + $0x1d0] sm:$0xff]  }
  0x59   :  { %v1419_v42 = vld [vmem:[#allocation5 + $0x100] sm:$0xff]   ;;  %v1422_v45 = vld [vmem:[#allocation5 + $0x1c8] sm:$0xff]   ;;  %v1427_v50 = vld [vmem:[#allocation5 + $0x110] sm:$0xff]  }
  0x5a   :  { %1270 = vmatpush3.bf16.msra.mxu0 %v1399_v14  ;;  %717 = vmatprep.mubr.bf16.mxu1 %v1162_v39  ;;  %v1420_v43 = vld [vmem:[#allocation5 + $0x180] sm:$0xff]   ;;  %v1423_v46 = vld [vmem:[#allocation5 + $0x108] sm:$0xff]   ;;  %v1428_v51 = vld [vmem:[#allocation5 + $0x190] sm:$0xff]  }
  0x5b   :  { %1292 = vmatpush3.bf16.msra.mxu1 %v1400_v15  ;;  %1271 = vmatprep.subr.bf16.mxu0 %v1401_v16  ;;  %v1424_v47 = vld [vmem:[#allocation5 + $0x188] sm:$0xff]   ;;  %v1429_v52 = vld [vmem:[#allocation5 + $0x158] sm:$0xff]   ;;  %v1433_v56 = vld [vmem:[#allocation5 + $0x160] sm:$0xff]  }
  0x5c   :  { %1293 = vmatprep.subr.bf16.mxu1 %v1402_v17  ;;  %v1430_v53 = vld [vmem:[#allocation5 + $0x1d8] sm:$0xff]   ;;  %v1434_v57 = vld [vmem:[#allocation5 + $0x1e0] sm:$0xff]   ;;  %v1437_v60 = vld [vmem:[#allocation5 + $0x168] sm:$0xff]  }
  0x5d   :  { %v1431_v54 = vld [vmem:[#allocation5 + $0x118] sm:$0xff]   ;;  %v1435_v58 = vld [vmem:[#allocation5 + $0x120] sm:$0xff]   ;;  %v1438_v61 = vld [vmem:[#allocation5 + $0x1e8] sm:$0xff]  }
  0x5e   :  { %1272 = vmatpush3.bf16.msra.mxu0 %v1403_v18  ;;  %v1432_v55 = vld [vmem:[#allocation5 + $0x198] sm:$0xff]   ;;  %v1436_v59 = vld [vmem:[#allocation5 + $0x1a0] sm:$0xff]   ;;  %v1439_v62 = vld [vmem:[#allocation5 + $0x128] sm:$0xff]  }
  0x5f   :  { %1294 = vmatpush3.bf16.msra.mxu1 %v1404_v19  ;;  %1273 = vmatprep.subr.bf16.mxu0 %v1405_v20  ;;  %v1440_v63 = vld [vmem:[#allocation5 + $0x1a8] sm:$0xff]   ;;  %v1441_v0 = vld [vmem:[#allocation5 + $0x170] sm:$0xff]   ;;  %v1445_v4 = vld [vmem:[#allocation5 + $0x178] sm:$0xff]  }
  0x60   :  { %1295 = vmatprep.subr.bf16.mxu1 %v1406_v21  ;;  %v1442_v1 = vld [vmem:[#allocation5 + $0x1f0] sm:$0xff]   ;;  %v1446_v5 = vld [vmem:[#allocation5 + $0x1f8] sm:$0xff]   ;;  %v1449_v16 = vld [vmem:[#allocation7] ss:$8 sps:$4 sm:$0xff]  }
  0x61   :  { %v1443_v2 = vld [vmem:[#allocation5 + $0x130] sm:$0xff]   ;;  %v1447_v6 = vld [vmem:[#allocation5 + $0x138] sm:$0xff]   ;;  %v1451_v17 = vld [vmem:[#allocation7 + $0x4] ss:$8 sps:$4 sm:$0xff]  }
  0x62   :  { %1274 = vmatpush3.bf16.msra.mxu0 %v1407_v22  ;;  %v1444_v3 = vld [vmem:[#allocation5 + $0x1b0] sm:$0xff]   ;;  %v1448_v7 = vld [vmem:[#allocation5 + $0x1b8] sm:$0xff]   ;;  %v1457_v20 = vld [vmem:[#allocation7 + $0x24] ss:$8 sps:$4 sm:$0xff]  }
  0x63   :  { %1296 = vmatpush3.bf16.msra.mxu1 %v1408_v23  ;;  %1275 = vmatprep.subr.bf16.mxu0 %v1409_v24  ;;  %v79_v8 = vld [vmem:[#allocation2 + $0x10] sm:$0xff]  ;;  %v80_v12 = vld [vmem:[#allocation2 + $0x18] sm:$0xff]  ;;  %v1455_v21 = vld [vmem:[#allocation7 + $0x20] ss:$8 sps:$4 sm:$0xff]  }
  0x64   :  { %1297 = vmatprep.subr.bf16.mxu1 %v1410_v25  ;;  %v83_v9 = vld [vmem:[#allocation2 + $0x30] sm:$0xff]  ;;  %v84_v13 = vld [vmem:[#allocation2 + $0x38] sm:$0xff]  ;;  %v1463_v24 = vld [vmem:[#allocation7 + $0x44] ss:$8 sps:$4 sm:$0xff]  }
  0x65   :  { %v1163_v10 = vcombine.low %v79_v8, %v83_v9  ;;  %v1164_v11 = vcombine.high %v79_v8, %v83_v9  ;;  %v1165_v14 = vcombine.low %v80_v12, %v84_v13  ;;  %v1166_v15 = vcombine.high %v80_v12, %v84_v13  ;;  %v1454_v18 = vld [vmem:[#allocation7 + $0x14] ss:$8 sps:$4 sm:$0xff]   ;;  %v1452_v19 = vld [vmem:[#allocation7 + $0x10] ss:$8 sps:$4 sm:$0xff]   ;;  %v1461_v25 = vld [vmem:[#allocation7 + $0x40] ss:$8 sps:$4 sm:$0xff]  }
  0x66   :  { %1276 = vmatpush3.bf16.msra.mxu0 %v1411_v26  ;;  %v1460_v22 = vld [vmem:[#allocation7 + $0x34] ss:$8 sps:$4 sm:$0xff]   ;;  %v1458_v23 = vld [vmem:[#allocation7 + $0x30] ss:$8 sps:$4 sm:$0xff]   ;;  %v1473_v33 = vld [vmem:[#allocation8 + $0x40] sm:$0xff]  }
  0x67   :  { %1298 = vmatpush3.bf16.msra.mxu1 %v1412_v27  ;;  %1277 = vmatprep.subr.bf16.mxu0 %v1413_v28  ;;  %v1466_v26 = vld [vmem:[#allocation7 + $0x54] ss:$8 sps:$4 sm:$0xff]   ;;  %v1464_v27 = vld [vmem:[#allocation7 + $0x50] ss:$8 sps:$4 sm:$0xff]   ;;  %v1469_v28 = vld [vmem:[#allocation7 + $0x64] ss:$8 sps:$4 sm:$0xff]  }
  0x68   :  { %1299 = vmatprep.subr.bf16.mxu1 %v1414_v29  ;;  %v1467_v29 = vld [vmem:[#allocation7 + $0x60] ss:$8 sps:$4 sm:$0xff]   ;;  %v1477_v37 = vld [vmem:[#allocation8 + $0x50] sm:$0xff]   ;;  %v1479_v39 = vld [vmem:[#allocation8 + $0x58] sm:$0xff]  }
  0x69   :  { %v1474_v34 = vld [vmem:[#allocation8] sm:$0xff]   ;;  %v1476_v36 = vld [vmem:[#allocation8 + $0x8] sm:$0xff]  }
  0x6a   :  { %1278 = vmatpush3.bf16.msra.mxu0 %v1415_v30  ;;  %v1472_v30 = vld [vmem:[#allocation7 + $0x74] ss:$8 sps:$4 sm:$0xff]  }
  0x6b   :  { %1300 = vmatpush3.bf16.msra.mxu1 %v1416_v31  ;;  %1307 = vmatprep.subr.bf16.mxu0 %v1417_v40  ;;  %v1470_v31 = vld [vmem:[#allocation7 + $0x70] ss:$8 sps:$4 sm:$0xff]  }
  0x6c   :  { %1329 = vmatprep.subr.bf16.mxu1 %v1418_v41  ;;  %v1480_v40 = vld [vmem:[#allocation8 + $0x18] sm:$0xff]   ;;  %v1481_v41 = vld [vmem:[#allocation8 + $0x60] sm:$0xff]  }
  0x6d   :  { %677 = vmatmul.mubr.bf16.vlgmr.msra.gmra.mrb[0].mxu0 %v1159_v35  ;;  %v1475_v35 = vld [vmem:[#allocation8 + $0x48] sm:$0xff]  }
  0x6e   :  { %718 = vmatmul.mubr.bf16.vlgmr.msra.gmra.mrb[0].mxu1 %v1161_v38  ;;  %1308 = vmatpush3.bf16.msra.mxu0 %v1419_v42  ;;  %v1478_v38 = vld [vmem:[#allocation8 + $0x10] sm:$0xff]  }
  0x6f   :  { %1330 = vmatpush3.bf16.msra.mxu1 %v1420_v43  ;;  %1309 = vmatprep.subr.bf16.mxu0 %v1421_v44  ;;  %v1158_v44 = vld [vmem:[%s1726_s2] ss:$0 sm:$0xff]  ;;  %s1618_s2 = smov [#allocation10]  }
  0x70   :  { %1331 = vmatprep.subr.bf16.mxu1 %v1422_v45  ;;  %758 = vmatprep.mubr.bf16.mxu0 %v1164_v11  ;;  %s1144_s29 = sshll.u32 %s1618_s2, 4  ;;  %s1145_s29 = int_to_ptr.vmem [resolvable:$true] %s1144_s29 }
  0x71   :  { %799 = vmatprep.mubr.bf16.mxu1 %v1166_v15  ;;  %v1483_v15 = vld [vmem:[#allocation8 + $0x68] sm:$0xff]   ;;  %s1577_s20 = scalar_lea.vmem %s1145_s29, 256  ;;  %p1582_p5 = scmp.lt.s32.totalorder %s1145_s29, %s1145_s29 }
  0x72   :  { %1310 = vmatpush3.bf16.msra.mxu0 %v1423_v46  ;;  %p1578_p4 = scmp.ne.s32.totalorder %s1145_s29, %s1577_s20  ;;  %p1583_p6 = scmp.lt.s32.totalorder %s1577_s20, %s1577_s20 }
  0x73   :  { %1332 = vmatpush3.bf16.msra.mxu1 %v1424_v47  ;;  %1311 = vmatprep.subr.bf16.mxu0 %v1425_v48 }
  0x74   :  { %1333 = vmatprep.subr.bf16.mxu1 %v1426_v49  ;;  %p1584_p7 = por %p1583_p6, %p1582_p5 }
  0x76   :  { %1312 = vmatpush3.bf16.msra.mxu0 %v1427_v50  ;;  %p1585_p8 = pnand %p1584_p7, %p1578_p4 }
  0x77   :  { %1334 = vmatpush3.bf16.msra.mxu1 %v1428_v51  ;;  %1313 = vmatprep.subr.bf16.mxu0 %v1429_v52 }
  0x78   :  { %1335 = vmatprep.subr.bf16.mxu1 %v1430_v53 }
  0x7a   :  { %1314 = vmatpush3.bf16.msra.mxu0 %v1431_v54 }
  0x7b   :  { %1336 = vmatpush3.bf16.msra.mxu1 %v1432_v55  ;;  %1315 = vmatprep.subr.bf16.mxu0 %v1433_v56 }
  0x7c   :  { %1337 = vmatprep.subr.bf16.mxu1 %v1434_v57 }
  0x7e   :  { %1316 = vmatpush3.bf16.msra.mxu0 %v1435_v58 }
  0x7f   :  { %1338 = vmatpush3.bf16.msra.mxu1 %v1436_v59  ;;  %1317 = vmatprep.subr.bf16.mxu0 %v1437_v60 }
  0x80   :  { %1339 = vmatprep.subr.bf16.mxu1 %v1438_v61 }
  0x82   :  { %1318 = vmatpush3.bf16.msra.mxu0 %v1439_v62 }
  0x83   :  { %1340 = vmatpush3.bf16.msra.mxu1 %v1440_v63  ;;  %1319 = vmatprep.subr.bf16.mxu0 %v1441_v0 }
  0x84   :  { %1341 = vmatprep.subr.bf16.mxu1 %v1442_v1 }
  0x86   :  { %1320 = vmatpush3.bf16.msra.mxu0 %v1443_v2 }
  0x87   :  { %1342 = vmatpush3.bf16.msra.mxu1 %v1444_v3  ;;  %1321 = vmatprep.subr.bf16.mxu0 %v1445_v4 }
  0x88   :  { %1343 = vmatprep.subr.bf16.mxu1 %v1446_v5 }
  0x8a   :  { %1322 = vmatpush3.bf16.msra.mxu0 %v1447_v6 }
  0x8b   :  { %1344 = vmatpush3.bf16.msra.mxu1 %v1448_v7  ;;  %907 = vmatprep.subr.bf16.mxu0 %v1451_v17  ;;  %v1485_v17 = vld [vmem:[#allocation8 + $0x70] sm:$0xff]  }
  0x8c   :  { %1351 = vmatprep.subr.bf16.mxu1 %v1473_v33 }
  0x8d   :  { %759 = vmatmul.mubr.bf16.vlgmr.msra.gmra.mrb[4].mxu0 %v1163_v10 }
  0x8e   :  { %800 = vmatmul.mubr.bf16.vlgmr.msra.gmra.mrb[4].mxu1 %v1165_v14  ;;  %908 = vmatpush1.bf16.msra.mxu0 %v1449_v16  ;;  %v1482_v14 = vld [vmem:[#allocation8 + $0x20] sm:$0xff]   ;;  %v1484_v16 = vld [vmem:[#allocation8 + $0x28] sm:$0xff]  }
  0x8f   :  { %909 = vmatprep.subr.bf16.mxu0 %v1454_v18  ;;  %939 = vmatprep.mubr.bf16.mxu0 %v1617_v32  ;;  %v1486_v18 = vld [vmem:[#allocation8 + $0x30] sm:$0xff]  }
  0x90   :  { %1352 = vmatpush3.bf16.msra.mxu1 %v1474_v34 }
  0x91   :  { %1353 = vmatprep.subr.bf16.mxu1 %v1475_v35 }
  0x92   :  { %910 = vmatpush1.bf16.msra.mxu0 %v1452_v19  ;;  %v1487_v19 = vld [vmem:[#allocation8 + $0x78] sm:$0xff]  }
  0x93   :  { %911 = vmatprep.subr.bf16.mxu0 %v1457_v20  ;;  %v1488_v20 = vld [vmem:[#allocation8 + $0x38] sm:$0xff]  }
  0x94   :  { %1354 = vmatpush3.bf16.msra.mxu1 %v1476_v36 }
  0x95   :  { %1355 = vmatprep.subr.bf16.mxu1 %v1477_v37 }
  0x96   :  { %912 = vmatpush1.bf16.msra.mxu0 %v1455_v21 }
  0x97   :  { %913 = vmatprep.subr.bf16.mxu0 %v1460_v22 }
  0x98   :  { %1356 = vmatpush3.bf16.msra.mxu1 %v1478_v38 }
  0x99   :  { %1357 = vmatprep.subr.bf16.mxu1 %v1479_v39 }
  0x9a   :  { %914 = vmatpush1.bf16.msra.mxu0 %v1458_v23 }
  0x9b   :  { %915 = vmatprep.subr.bf16.mxu0 %v1463_v24 }
  0x9c   :  { %1358 = vmatpush3.bf16.msra.mxu1 %v1480_v40 }
  0x9d   :  { %1359 = vmatprep.subr.bf16.mxu1 %v1481_v41 }
  0x9e   :  { %916 = vmatpush1.bf16.msra.mxu0 %v1461_v25 }
  0x9f   :  { %917 = vmatprep.subr.bf16.mxu0 %v1466_v26 }
  0xa0   :  { %1360 = vmatpush3.bf16.msra.mxu1 %v1482_v14 }
  0xa1   :  { %1361 = vmatprep.subr.bf16.mxu1 %v1483_v15 }
  0xa2   :  { %918 = vmatpush1.bf16.msra.mxu0 %v1464_v27 }
  0xa3   :  { %919 = vmatprep.subr.bf16.mxu0 %v1469_v28 }
  0xa4   :  { %1362 = vmatpush3.bf16.msra.mxu1 %v1484_v16 }
  0xa5   :  { %1363 = vmatprep.subr.bf16.mxu1 %v1485_v17 }
  0xa6   :  { %920 = vmatpush1.bf16.msra.mxu0 %v1467_v29 }
  0xa7   :  { %921 = vmatprep.subr.bf16.mxu0 %v1472_v30 }
  0xa8   :  { %1364 = vmatpush3.bf16.msra.mxu1 %v1486_v18 }
  0xa9   :  { %1365 = vmatprep.subr.bf16.mxu1 %v1487_v19 }
  0xaa   :  { %922 = vmatpush1.bf16.msra.mxu0 %v1470_v31 }
  0xac   :  { %1366 = vmatpush3.bf16.msra.mxu1 %v1488_v20 }
 0x140   :  { %v1279_v42 = vpop.f32.mrb[0].mxu0 }
 0x141   :  { %v1301_v43 = vpop.f32.mrb[0].mxu1  ;;  %v1280_v45 = vpop.f32.mrb[1].mxu0 }
 0x142   :  { %v1281_v46 = vadd.f32 %v1280_v45, %v1279_v42  ;;  %v1302_v47 = vpop.f32.mrb[1].mxu1  ;;  %v1282_v48 = vpop.f32.mrb[2].mxu0 }
 0x143   :  { %v1303_v49 = vadd.f32 %v1302_v47, %v1301_v43  ;;  %v1304_v50 = vpop.f32.mrb[2].mxu1  ;;  %v1283_v51 = vpop.f32.mrb[3].mxu0 }
 0x144   :  { %v679_v52 = vadd.f32 %v1281_v46, %v1158_v44  ;;  %v1284_v53 = vadd.f32 %v1283_v51, %v1282_v48  ;;  %v1305_v54 = vpop.f32.mrb[3].mxu1 }
 0x145   :  { %v1306_v55 = vadd.f32 %v1305_v54, %v1304_v50 }
 0x146   :  { %v720_v56 = vadd.f32 %v1303_v49, %v679_v52  ;;  %v682_v57 = vadd.f32 %v1284_v53, %v1158_v44 }
 0x148   :  { %v723_v58 = vadd.f32 %v1306_v55, %v682_v57 }
 0x160   :  { %v1323_v59 = vpop.f32.mrb[4].mxu0 }
 0x161   :  { %v1345_v60 = vpop.f32.mrb[4].mxu1  ;;  %v1324_v61 = vpop.f32.mrb[5].mxu0 }
 0x162   :  { %v1325_v62 = vadd.f32 %v1324_v61, %v1323_v59  ;;  %v1346_v63 = vpop.f32.mrb[5].mxu1  ;;  %v1326_v0 = vpop.f32.mrb[6].mxu0 }
 0x163   :  { %v1347_v1 = vadd.f32 %v1346_v63, %v1345_v60  ;;  %v1348_v2 = vpop.f32.mrb[6].mxu1  ;;  %v1327_v3 = vpop.f32.mrb[7].mxu0 }
 0x164   :  { %v761_v4 = vadd.f32 %v1325_v62, %v720_v56  ;;  %v1328_v5 = vadd.f32 %v1327_v3, %v1326_v0  ;;  %v1349_v6 = vpop.f32.mrb[7].mxu1 }
 0x165   :  { %v1350_v7 = vadd.f32 %v1349_v6, %v1348_v2 }
 0x166   :  { %v802_v8 = vadd.f32 %v1347_v1, %v761_v4  ;;  %v764_v9 = vadd.f32 %v1328_v5, %v723_v58 }
 0x168   :  { %v805_v10 = vadd.f32 %v1350_v7, %v764_v9  ;;  %v808_v11 = vmax.f32 %v802_v8, 0.0 }
 0x16a   :  { %v809_v12 = vmax.f32 %v805_v10, 0.0 }
 0x16c   :  { %v810_v13 = vpack.c.bf16 %v809_v12, %v808_v11 }
 0x16e   :  { %940 = vmatmul.mubr.bf16.vlgmr.msra.gmra.mrb[8].mxu0 %v810_v13 }
 0x241   :  { %v941_v21 = vpop.f32.mrb[8].mxu0 }
 0x242   :  { %v950_v22 = vmul.f32 0.09, %v941_v21  ;;  %v943_v23 = vpop.f32.mrb[9].mxu0 }
 0x243   :  { %v951_v24 = vmul.f32 0.09, %v943_v23  ;;  %v945_v25 = vpop.f32.mrb[10].mxu0 }
 0x244   :  { %v954_v26 = vadd.f32 0.5, %v950_v22  ;;  %v952_v27 = vmul.f32 0.09, %v945_v25  ;;  %v947_v28 = vpop.f32.mrb[11].mxu0 }
 0x245   :  { %v955_v29 = vadd.f32 0.5, %v951_v24  ;;  %v953_v30 = vmul.f32 0.09, %v947_v28 }
 0x246   :  { %v958_v31 = vmul.f32 %v954_v26, %v941_v21  ;;  %v956_v32 = vadd.f32 0.5, %v952_v27 }
 0x247   :  { %v959_v33 = vmul.f32 %v955_v29, %v943_v23  ;;  %v957_v34 = vadd.f32 0.5, %v953_v30 }
 0x248   :  { %v960_v35 = vmul.f32 %v956_v32, %v945_v25  ;;  %v962_v37 = vadd.f32 0.47, %v958_v31 }
 0x249   :  { %v961_v36 = vmul.f32 %v957_v34, %v947_v28  ;;  %v963_v39 = vadd.f32 0.47, %v959_v33 }
 0x24a   :  { %v964_v38 = vadd.f32 0.47, %v960_v35 }
 0x24b   :  { %v965_v40 = vadd.f32 0.47, %v961_v36 }
 0x24c   :  { %v966_v41 = vpack.c.bf16 %v964_v38, %v962_v37 }
 0x24d   :  { %v967_v42 = vpack.c.bf16 %v965_v40, %v963_v39 }
 0x24f   :  { %1128 = vmatprep.mubr.bf16.mxu1 %v967_v42 }
 0x250   :  { %1129 = vmatmul.mubr.bf16.vlgmr.msra.gmra.mrb[8].mxu1 %v966_v41 }
 0x323   :  { %v1367_v43 = vpop.f32.mrb[8].mxu1 }
 0x324   :  { %v1368_v44 = vpop.f32.mrb[9].mxu1 }
 0x325   :  { %v1369_v45 = vadd.f32 %v1368_v44, %v1367_v43  ;;  %v1370_v46 = vpop.f32.mrb[10].mxu1 }
 0x326   :  { %v1371_v47 = vpop.f32.mrb[11].mxu1 }
 0x327   :  { %1137 = vst [vmem:[#allocation10] sm:$0xff] %v1369_v45  ;;  %v1372_v48 = vadd.f32 %v1371_v47, %v1370_v46 }
 0x329   :  { %1138 = vst [vmem:[#allocation10 + $0x8] sm:$0xff] %v1372_v48 }
 0x32a   :  { %1588 = shalt.err (!%p1585_p8)
}
 0x32b   :  { %s1589_s23 = scalar_lea.hbm %s1729_s5, 256 }
 0x32c   :  { %p1590_p9 = scmp.ne.s32.totalorder %s1729_s5, %s1589_s23  ;;  %p1593_p10 = scmp.lt.u32.totalorder %s1589_s23, %s1729_s5 }
 0x32e   :  { %p1595_p11 = pnand %p1593_p10, %p1590_p9 }
 0x330   :  { %1598 = shalt.err (!%p1595_p11)
}
 0x331   :  { %1150 = dma.vmem_to_hbm [thread:$0]  %s1145_s29, 256, %s1729_s5, [#allocation4], %s1614_s0, %s1614_s0, %s1615_s7  }
 0x332   :  { %1605 = dma.done.wait [#allocation4], 256  }
 0x333   :  { %1606 = vsyncadd [#allocation4], 4294967040 }
 0x334   :  { %1154 = vsyncpa [#allocation3], 1 }
 0x335   :  { %1155 = vsyncpa [#allocation6], 1 }
 0x336   :  { %1156 = vsyncpa [#allocation9], 1 }
 0x337   :  { %1157 = vsyncpa [#allocation4], 1 }

</bundles_post_ra>
